<compile_context>
chip_gen: v7x
topology: tpu7x:2x2x1
jax: 0.10.0
libtpu: 0.0.40
codegen_flags: <defaults>
</compile_context>

<pallas_src>
import functools

import jax
import jax.numpy as jnp
from jax import lax
from jax.experimental import pallas as pl
from jax.experimental.pallas import tpu as pltpu


# --------------------------------- kernel -----------------------------------
def _smooth_ap_kernel(q16_ref, spb_ref, x_ref, out_ref, acc_ref, *,
                      anneal, batch_size, tile_b, acc_w, steps_per_core,
                      need_mask, use_highest_precision, approx_recip):
    """One grid step: fold a (tile_b, D) batch slice into this core's rank sums.

    Refs:
      q16_ref : (16, D)       row-replicated queries, q16[4*i + j] = preds[i]
      spb_ref : (16, 1)       reference scores sim_all[i, j] (f32)
      x_ref   : (tile_b, D)   streamed batch tile (stream dtype)
      out_ref : (1, 16, 1)    this core's partial rank sums (written last step)
      acc_ref : (16, acc_w)   per-lane partial rank sums (f32 scratch)
    """
    s_idx = pl.program_id(1)
    last = pl.num_programs(1) - 1

    @pl.when(s_idx == 0)
    def _init():
        acc_ref[...] = jnp.zeros_like(acc_ref)

    # s16[4*i + j, k] = <preds[i], tile[k]>  (MXU, f32 accumulation).
    prec = lax.Precision.HIGHEST if use_highest_precision else None
    s16 = lax.dot_general(q16_ref[...], x_ref[...],
                          (((1,), (1,)), ((), ())),
                          preferred_element_type=jnp.float32,
                          precision=prec)                      # (16, tile_b)

    # Temperature sigmoid of the score differences; the (16, 1) reference score
    # broadcasts across lanes in-register.  torch clamps the exponent to
    # [-50, 50]; the lower clamp is a no-op in f32 (exp underflow -> sigmoid 1).
    e = (s16 - spb_ref[...]) * jnp.float32(-1.0 / anneal)
    e = jnp.minimum(e, jnp.float32(50.0))
    sig = pl.reciprocal(1.0 + jnp.exp(e), approx=approx_recip)  # (16, tile_b)

    if need_mask:
        # Zero lanes past the end of the batch.  Select (not multiply) so that
        # garbage / NaN in padded or clamped-OOB tiles cannot leak through.
        g = pl.program_id(0) * steps_per_core + s_idx           # logical block id
        col = g * tile_b + lax.broadcasted_iota(jnp.int32, (16, tile_b), 1)
        sig = jnp.where(col < batch_size, sig, 0.0)

    # Per-lane partial accumulation; cross-lane reduce deferred to the epilogue.
    partial = sig[:, 0:acc_w]
    for c in range(1, tile_b // acc_w):
        partial = partial + sig[:, c * acc_w:(c + 1) * acc_w]
    acc_ref[...] += partial

    @pl.when(s_idx == last)
    def _finalize():
        out_ref[...] = jnp.sum(acc_ref[...], axis=-1, keepdims=True)[None]


# ------------------------------ sizing helpers -------------------------------
def _detect_num_cores():
    """2 TensorCores share the batch stream on v7x; 1 elsewhere."""
    try:
        if "v7" in jax.devices()[0].device_kind.lower():
            return 2
    except Exception:
        pass
    return 1


def _vmem_limit_bytes():
    """Scoped-VMEM limit with headroom, hard-guarded for v7x's 64 MiB/TC."""
    cap = 128 << 20
    try:
        cap = int(pltpu.get_tpu_info().vmem_capacity_bytes)
    except Exception:
        pass
    try:
        if "v7" in jax.devices()[0].device_kind.lower():
            cap = min(cap, 64 << 20)        # per-TensorCore on v7x
    except Exception:
        pass
    # 75% of capacity, never above 96 MiB: v7x -> 48 MiB, v5e/v6e -> 96 MiB.
    return max(16 << 20, min((cap * 3) // 4, 96 << 20))


def _sublane_multiple(dtype):
    """Rows per packed vreg: 8 for f32, 16 for bf16, 32 for int8/fp8."""
    return max(8, 32 // jnp.dtype(dtype).itemsize)


def _pick_tile_b(batch_size, feat_dims, stream_itemsize, num_cores,
                 budget_bytes, sublane):
    """Balanced batch tile whose double-buffered stream fits the VMEM budget."""
    # Live bytes per streamed batch row: 2x (double-buffered) input row plus
    # ~2 f32 16-deep elementwise slabs of internal scratch per lane.
    per_row = 2 * feat_dims * stream_itemsize + 2 * 16 * 4
    tile_max = max(sublane, int(budget_bytes // per_row))
    # Fewest blocks (a multiple of num_cores) whose tile fits, then round each
    # block's row count UP to the dtype's sublane pack (balanced, no tiny tail).
    nblocks = max(num_cores, pl.cdiv(batch_size, tile_max))
    nblocks = pl.cdiv(nblocks, num_cores) * num_cores
    if nblocks == 1:
        return batch_size                       # whole batch in one block
    tile = pl.cdiv(pl.cdiv(batch_size, nblocks), sublane) * sublane
    return batch_size if tile >= batch_size else tile


# --------------------------------- wrapper -----------------------------------
def smooth_ap_loss(preds, *, anneal, batch_size, num_id, feat_dims,
                   stream_dtype=None, tile_b=None, num_cores=None,
                   vmem_limit_bytes=None, approx_recip=False):
    """Pallas TPU implementation of SmoothAP.forward.  Returns shape-(1,) f32.

    stream_dtype: dtype of the HBM->VMEM batch stream (defaults to preds.dtype).
      The kernel is HBM-bandwidth bound on v5e/v6e/v7x, so feeding / requesting
      bf16 halves streamed bytes (~2x end-to-end for f32 callers).
    approx_recip: use the EUP approximate reciprocal for the sigmoid divide
      (small win on v5e at small feat_dims; slightly changes numerics).
    """
    assert batch_size % num_id == 0             # __init__ contract of the module
    assert batch_size >= 4                      # forward hard-codes a 4-positive set
    assert preds.shape == (batch_size, feat_dims)

    stream_dtype = jnp.dtype(preds.dtype if stream_dtype is None else stream_dtype)
    preds_s = preds if preds.dtype == stream_dtype else preds.astype(stream_dtype)
    use_highest = stream_dtype == jnp.float32   # exact MXU passes; free (mem-bound)

    if num_cores is None:
        num_cores = _detect_num_cores()
    num_cores = max(1, int(num_cores))
    if vmem_limit_bytes is None:
        vmem_limit_bytes = _vmem_limit_bytes()
    vmem_limit_bytes = int(vmem_limit_bytes)

    sublane = _sublane_multiple(stream_dtype)
    if tile_b is None:
        fixed = 2 * 16 * feat_dims * stream_dtype.itemsize + 16 * 128 * 4 + (4 << 20)
        budget = max(1 << 20, vmem_limit_bytes - fixed)   # per_row already has the 2x
        tile_b = _pick_tile_b(batch_size, feat_dims, stream_dtype.itemsize,
                              num_cores, budget, sublane)
    tile_b = int(tile_b)
    assert 4 <= tile_b <= batch_size
    assert tile_b == batch_size or tile_b % sublane == 0, (
        f"tile_b must be a multiple of the {stream_dtype} sublane pack ({sublane})")

    # ---- tiny host-side precompute: queries, reference scores, positive branch
    q4 = preds_s[0:4]
    q16 = jnp.repeat(q4, 4, axis=0)                                   # (16, D)
    q4f = q4.astype(jnp.float32)
    s44 = jnp.matmul(q4f, q4f.T, precision=lax.Precision.HIGHEST)     # sim_all[:4,:4]
    spb16 = s44.reshape(16, 1)                                        # sim_all[i, j]
    pdiff = s44[:, None, :] - s44[:, :, None]                         # [i,j,k]
    pexp = jnp.clip(-pdiff / jnp.float32(anneal), -50.0, 50.0)
    # unmasked sum + 0.5 == eye-masked sum + 1  (k==j term is exactly 0.5)
    pos_rk16 = jnp.sum(1.0 / (1.0 + jnp.exp(pexp)), axis=-1).reshape(16) + 0.5

    # ---- grid geometry: (core, batch_step); batch axis is the reduction ------
    num_blocks = pl.cdiv(batch_size, tile_b)
    steps_per_core = pl.cdiv(num_blocks, num_cores)
    last_block = num_blocks - 1
    need_clamp = num_cores * steps_per_core > num_blocks
    need_mask = num_cores * steps_per_core * tile_b != batch_size
    acc_w = 128 if tile_b % 128 == 0 else tile_b

    if need_clamp:
        x_map = lambda c, s: (jnp.minimum(c * steps_per_core + s, last_block), 0)
    else:
        x_map = lambda c, s: (c * steps_per_core + s, 0)

    kernel = functools.partial(
        _smooth_ap_kernel, anneal=float(anneal), batch_size=batch_size,
        tile_b=tile_b, acc_w=acc_w, steps_per_core=steps_per_core,
        need_mask=need_mask, use_highest_precision=use_highest,
        approx_recip=bool(approx_recip))

    partials = pl.pallas_call(
        kernel,
        out_shape=jax.ShapeDtypeStruct((num_cores, 16, 1), jnp.float32),
        grid_spec=pltpu.PrefetchScalarGridSpec(
            num_scalar_prefetch=0,
            grid=(num_cores, steps_per_core),
            in_specs=[
                pl.BlockSpec((16, feat_dims), lambda c, s: (0, 0)),   # q16 (resident)
                pl.BlockSpec((16, 1), lambda c, s: (0, 0)),           # spb (resident)
                pl.BlockSpec((tile_b, feat_dims), x_map),             # streamed batch
            ],
            out_specs=pl.BlockSpec((1, 16, 1), lambda c, s: (c, 0, 0)),
            scratch_shapes=[pltpu.VMEM((16, acc_w), jnp.float32)],
        ),
        compiler_params=pltpu.CompilerParams(
            dimension_semantics=("parallel", "arbitrary"),
            vmem_limit_bytes=vmem_limit_bytes),
    )(q16, spb16, preds_s)

    # ---- tiny JAX epilogue: combine per-core partials, ratios, final loss ----
    all_rk = jnp.sum(partials, axis=0).reshape(16) + 0.5    # == masked sum + 1
    loss = 1.0 - jnp.sum(pos_rk16 / all_rk) * jnp.float32(1.0 / 16.0)
    return loss.reshape(1).astype(jnp.float32)


# ---------------- pure-JAX reference (mirrors the PyTorch module) -------------
def _sigmoid_ref(t, temp):
    expo = jnp.clip(-t / temp, -50.0, 50.0)
    return 1.0 / (1.0 + jnp.exp(expo))


def _smooth_ap_ref(preds, anneal, batch_size):
    preds = preds.astype(jnp.float32)
    hp = lax.Precision.HIGHEST
    B = batch_size
    mask = 1.0 - jnp.eye(B, dtype=jnp.float32)
    sim_all = jnp.matmul(preds, preds.T, precision=hp)
    sim_diff = sim_all[:, None, :] - sim_all[:, :, None]     # [i,j,k]=s[i,k]-s[i,j]
    sim_sg = _sigmoid_ref(sim_diff, anneal) * mask[None, :, :]
    sim_all_rk = jnp.sum(sim_sg, axis=-1) + 1.0

    y0 = preds[:4]
    pos_mask = 1.0 - jnp.eye(4, dtype=jnp.float32)
    sim_pos = jnp.matmul(y0, y0.T, precision=hp)
    sim_pos_diff = sim_pos[:, None, :] - sim_pos[:, :, None]
    sim_pos_sg = _sigmoid_ref(sim_pos_diff, anneal) * pos_mask[None, :, :]
    sim_pos_rk = jnp.sum(sim_pos_sg, axis=-1) + 1.0

    pos_divide = jnp.sum(sim_pos_rk / sim_all_rk[0:4, 0:4])
    return 1.0 - pos_divide / 16.0


if __name__ == "__main__":
    anneal = 0.01

    def check(preds, *, num_id, tol, **kw):
        B, D = preds.shape
        out = smooth_ap_loss(preds, anneal=anneal, batch_size=B, num_id=num_id,
                             feat_dims=D, **kw)
        out = jax.block_until_ready(out)
        ref = _smooth_ap_ref(preds, anneal, B)
        assert out.shape == (1,), out.shape
        assert jnp.allclose(out, ref, atol=tol, rtol=tol), (out, ref)
        return out

    k0, k1, k2, k3 = jax.random.split(jax.random.PRNGKey(0), 4)

    # 1) f32, small explicit tile -> 3-step reduction with a masked tail tile.
    p1 = jax.random.normal(k0, (20, 64), dtype=jnp.float32)
    p1 = p1 / jnp.linalg.norm(p1, axis=-1, keepdims=True)
    check(p1, num_id=5, tol=1e-4, tile_b=8, num_cores=1)

    # 2) bf16 streaming (caller passes bf16: half the HBM bytes), 16-row tiles.
    p2 = jax.random.normal(k1, (48, 128), dtype=jnp.float32)
    p2 = (p2 / jnp.linalg.norm(p2, axis=-1, keepdims=True)).astype(jnp.bfloat16)
    check(p2, num_id=4, tol=5e-3, tile_b=16, num_cores=1)

    # 3) two-way core split of the reduction (parallel axis + clamp + mask path).
    p3 = jax.random.normal(k2, (40, 64), dtype=jnp.float32)
    p3 = p3 / jnp.linalg.norm(p3, axis=-1, keepdims=True)
    check(p3, num_id=5, tol=1e-4, tile_b=8, num_cores=2)

    # 4) fully automatic tile size / core count / VMEM budget.
    p4 = jax.random.normal(k3, (64, 256), dtype=jnp.float32)
    p4 = p4 / jnp.linalg.norm(p4, axis=-1, keepdims=True)
    check(p4, num_id=8, tol=1e-4)

    print("KERNEL_OK")
</pallas_src>

<mosaic_0001>
module attributes {stable_mosaic.version = 11 : i64} {
  func.func @_smooth_ap_kernel(%arg0: i32, %arg1: i32, %arg2: memref<16x64xf32, #tpu.memory_space<vmem>>, %arg3: memref<16x1xf32, #tpu.memory_space<vmem>>, %arg4: memref<8x64xf32, #tpu.memory_space<vmem>>, %arg5: memref<1x16x1xf32, #tpu.memory_space<vmem>>, %arg6: memref<16x8xf32, #tpu.memory_space<vmem>>) attributes {dimension_semantics = [#tpu.dimension_semantics<parallel>, #tpu.dimension_semantics<arbitrary>], iteration_bounds = array<i64: 1, 3>, scalar_prefetch = 0 : i64, scratch_operands = 1 : i64, tpu.core_type = #tpu.core_type<tc>, window_params = [{pipeline_mode = #tpu.pipeline_mode<synchronous>, transform_indices = @transform_0, window_bounds = array<i64: 16, 64>}, {pipeline_mode = #tpu.pipeline_mode<synchronous>, transform_indices = @transform_1, window_bounds = array<i64: 16, 1>}, {transform_indices = @transform_2, window_bounds = array<i64: 8, 64>}, {transform_indices = @transform_3, window_bounds = array<i64: 1, 16, 1>}]} {
    %c0_i32 = arith.constant 0 : i32
    %0 = arith.cmpi eq, %arg1, %c0_i32 : i32
    %1 = arith.extui %0 : i1 to i32
    %c0_i32_0 = arith.constant 0 : i32
    %2 = arith.cmpi ne, %1, %c0_i32_0 : i32
    scf.if %2 {
      %cst_15 = arith.constant 0.000000e+00 : f32
      %33 = vector.broadcast %cst_15 : f32 to vector<16x8xf32>
      %c0_16 = arith.constant 0 : index
      %c0_17 = arith.constant 0 : index
      %34 = vector.load %arg6[%c0_16, %c0_17] : memref<16x8xf32, #tpu.memory_space<vmem>>, vector<16x8xf32>
      tpu.vector_store %arg6[%c0_16, %c0_17], %33 {strides = array<i32>} : memref<16x8xf32, #tpu.memory_space<vmem>>, vector<16x8xf32>,
    } else {
    }
    %c0 = arith.constant 0 : index
    %c0_1 = arith.constant 0 : index
    %3 = vector.load %arg2[%c0, %c0_1] : memref<16x64xf32, #tpu.memory_space<vmem>>, vector<16x64xf32>
    %c0_2 = arith.constant 0 : index
    %c0_3 = arith.constant 0 : index
    %4 = vector.load %arg4[%c0_2, %c0_3] : memref<8x64xf32, #tpu.memory_space<vmem>>, vector<8x64xf32>
    %cst = arith.constant dense<0.000000e+00> : vector<16x8xf32>
    %5 = tpu.matmul %3, %4, %cst {dimension_numbers = #tpu.dot_dimension_numbers<[1], [1], [0], [0], [0, 0, 1, 0], [], []>, precision = #tpu.contract_precision<fp32>} : vector<16x64xf32>, vector<8x64xf32>, vector<16x8xf32> -> vector<16x8xf32>
    %c0_4 = arith.constant 0 : index
    %c0_5 = arith.constant 0 : index
    %6 = vector.load %arg3[%c0_4, %c0_5] : memref<16x1xf32, #tpu.memory_space<vmem>>, vector<16x1xf32>
    %7 = vector.broadcast %6 : vector<16x1xf32> to vector<16x8xf32>
    %8 = arith.subf %5, %7 : vector<16x8xf32>
    %cst_6 = arith.constant -1.000000e+02 : f32
    %9 = vector.broadcast %cst_6 : f32 to vector<16x8xf32>
    %10 = arith.mulf %8, %9 : vector<16x8xf32>
    %cst_7 = arith.constant 5.000000e+01 : f32
    %11 = vector.broadcast %cst_7 : f32 to vector<16x8xf32>
    %12 = arith.minimumf %10, %11 : vector<16x8xf32>
    %13 = math.exp %12 : vector<16x8xf32>
    %cst_8 = arith.constant 1.000000e+00 : f32
    %14 = vector.broadcast %cst_8 : f32 to vector<16x8xf32>
    %15 = arith.addf %14, %13 : vector<16x8xf32>
    %16 = tpu.reciprocal %15 : vector<16x8xf32> -> vector<16x8xf32>
    %c3_i32 = arith.constant 3 : i32
    %17 = arith.muli %arg0, %c3_i32 : i32
    %18 = arith.addi %17, %arg1 : i32
    %c8_i32 = arith.constant 8 : i32
    %19 = arith.muli %18, %c8_i32 : i32
    %20 = tpu.iota {dimensions = array<i32: 1>} : vector<16x8xi32>
    %21 = vector.broadcast %19 : i32 to vector<16x8xi32>
    %22 = arith.addi %21, %20 : vector<16x8xi32>
    %c20_i32 = arith.constant 20 : i32
    %23 = vector.broadcast %c20_i32 : i32 to vector<16x8xi32>
    %24 = arith.cmpi slt, %22, %23 : vector<16x8xi32>
    %cst_9 = arith.constant 0.000000e+00 : f32
    %25 = vector.broadcast %cst_9 : f32 to vector<16x8xf32>
    %26 = arith.select %24, %16, %25 : vector<16x8xi1>, vector<16x8xf32>
    %c0_10 = arith.constant 0 : index
    %c0_11 = arith.constant 0 : index
    %27 = vector.load %arg6[%c0_10, %c0_11] : memref<16x8xf32, #tpu.memory_space<vmem>>, vector<16x8xf32>
    %28 = arith.addf %27, %26 : vector<16x8xf32>
    %c0_12 = arith.constant 0 : index
    %c0_13 = arith.constant 0 : index
    %29 = vector.load %arg6[%c0_12, %c0_13] : memref<16x8xf32, #tpu.memory_space<vmem>>, vector<16x8xf32>
    tpu.vector_store %arg6[%c0_12, %c0_13], %28 {strides = array<i32>} : memref<16x8xf32, #tpu.memory_space<vmem>>, vector<16x8xf32>,
    %c2_i32 = arith.constant 2 : i32
    %30 = arith.cmpi eq, %arg1, %c2_i32 : i32
    %31 = arith.extui %30 : i1 to i32
    %c0_i32_14 = arith.constant 0 : i32
    %32 = arith.cmpi ne, %31, %c0_i32_14 : i32
    scf.if %32 {
      %c0_15 = arith.constant 0 : index
      %c0_16 = arith.constant 0 : index
      %33 = vector.load %arg6[%c0_15, %c0_16] : memref<16x8xf32, #tpu.memory_space<vmem>>, vector<16x8xf32>
      %cst_17 = arith.constant dense<0.000000e+00> : vector<16xf32>
      %34 = vector.multi_reduction <add>, %33, %cst_17 [1] : vector<16x8xf32> to vector<16xf32>
      %35 = vector.shape_cast %34 : vector<16xf32> to vector<16x1xf32>
      %36 = vector.shape_cast %35 : vector<16x1xf32> to vector<1x16x1xf32>
      %c0_18 = arith.constant 0 : index
      %c0_19 = arith.constant 0 : index
      %c0_20 = arith.constant 0 : index
      %37 = vector.load %arg5[%c0_18, %c0_19, %c0_20] : memref<1x16x1xf32, #tpu.memory_space<vmem>>, vector<1x16x1xf32>
      tpu.vector_store %arg5[%c0_18, %c0_19, %c0_20], %36 {strides = array<i32>} : memref<1x16x1xf32, #tpu.memory_space<vmem>>, vector<1x16x1xf32>,
    } else {
    }
    return
  }
  func.func @transform_0(%arg0: i32, %arg1: i32) -> (i32, i32) {
    %c0_i32 = arith.constant 0 : i32
    %c0_i32_0 = arith.constant 0 : i32
    %c0_i32_1 = arith.constant 0 : i32
    return %c0_i32, %c0_i32_0 : i32, i32
  }
  func.func @transform_1(%arg0: i32, %arg1: i32) -> (i32, i32) {
    %c0_i32 = arith.constant 0 : i32
    %c0_i32_0 = arith.constant 0 : i32
    %c0_i32_1 = arith.constant 0 : i32
    return %c0_i32, %c0_i32_0 : i32, i32
  }
  func.func @transform_2(%arg0: i32, %arg1: i32) -> (i32, i32) {
    %c3_i32 = arith.constant 3 : i32
    %0 = arith.muli %arg0, %c3_i32 : i32
    %1 = arith.addi %0, %arg1 : i32
    %c0_i32 = arith.constant 0 : i32
    %c0_i32_0 = arith.constant 0 : i32
    return %1, %c0_i32 : i32, i32
  }
  func.func @transform_3(%arg0: i32, %arg1: i32) -> (i32, i32, i32) {
    %c0_i32 = arith.constant 0 : i32
    %c0_i32_0 = arith.constant 0 : i32
    %c0_i32_1 = arith.constant 0 : i32
    return %arg0, %c0_i32, %c0_i32_0 : i32, i32, i32
  }
}

</mosaic_0001>

<bundles_post_ra>
// kernel: tpu_custom_call.1
= control target key start
LH: loop header
LB: loop body
LE: loop exit
PB: predicated region body
PF: predicated region fallthrough
CT: control target
= control target key end

     0   :  { %8 = vsyncpa [#allocation4], 0  ;;  %s1483_s0 = inlined_call_operand.hbm [shape: f32[16,64], index: 0, kind: input, shape index: {}]   ;;  %s1484_s1 = inlined_call_operand.hbm [shape: f32[16,1], index: 1, kind: input, shape index: {}]   ;;  %s1485_s2 = inlined_call_operand.hbm [shape: f32[20,64], index: 2, kind: input, shape index: {}]   ;;  %s1486_s3 = inlined_call_operand.hbm [shape: f32[1,16,1], index: 3, kind: output, shape index: {}]  }
   0x1   :  { %9 = vsyncpa [#allocation7], 0 }
   0x2   :  { %10 = vsyncpa [#allocation5], 0  ;;  %s1267_s12 = smov 0   ;;  %s1269_s13 = smov 0  }
   0x3   :  { %s1271_s14 = smov 0   ;;  %s1273_s15 = smov 0  }
   0x4   :  { %s1275_s16 = smov 0   ;;  %s1277_s17 = smov 0  }
   0x5 LB: > { %s1296_s18 = sadd.s32 4294967295, %s1235_s17   ;;  %p94_p0 = scmp.ne.s32.totalorder %s1219_s13, %s1215_s12  ;;  %s1235_s17 = sphi %s1277_s17, %s16_s17   ;;  %s1231_s16 = sphi %s1275_s16, %s1505_s16   ;;  %s1227_s15 = sphi %s1273_s15, %s1504_s15   ;;  %s1223_s14 = sphi %s1271_s14, %s1503_s14   ;;  %s1219_s13 = sphi %s1269_s13, %s1502_s13   ;;  %s1215_s12 = sphi %s1267_s12, %s1501_s12  }
   0x6   : > { %p1487_p1 = scmp.eq.s32.totalorder %s1296_s18, 0  ;;  %p888_p2 = scmp.ge.s32.totalorder %s1235_s17, 1 }
   0x7   : > { %p131_p3 = scmp.lt.s32.totalorder %s1235_s17, 4  ;;  %s1237_s21 = smov [#allocation3]  }
   0x8   : > { %p1304_p4 = por %p1487_p1, %p94_p0  ;;  %s143_s22 = sshll.u32 %s1237_s21, 4  ;;  %s144_s22 = int_to_ptr.vmem [resolvable:$true] %s143_s22 }
   0x9   : > { %p1308_p5 = pnand %p888_p2, %p131_p3  ;;  %s1238_s24 = smov [#allocation6]  }
   0xa   : > { %s1490_s19 = scalar_select %p1304_p4, 1, 0 }
   0xb   : > { %s1491_s20 = scalar_select %p1308_p5, 1, 0 }
   0xc   : > { %p977_p6 = pneg %p1308_p5  ;;  %s156_s25 = sshll.u32 %s1238_s24, 4  ;;  %s1320_s25 = int_to_ptr.vmem [resolvable:$true] %s156_s25 }
   0xd   : > { %s1061_s28 = scalar_lea.hbm %s1483_s0, 256 }
   0xe   : > { %p1316_p7 = pnand %p977_p6, %p1487_p1  ;;  %p1062_p8 = scmp.ne.s32.totalorder %s1483_s0, %s1061_s28 }
   0xf   : > { %p1068_p12 = scmp.lt.u32.totalorder %s1061_s28, %s1483_s0 }
  0x10   : > { %p1063_p9 = pneg %p1316_p7 }
  0x12   : > { %p1064_p10 = pnand %p1063_p9, %p1062_p8 }
  0x14   : > { %p1065_p11 = pneg %p1064_p10 }
  0x16   : > { %p1070_p13 = pnand %p1068_p12, %p1065_p11 }
  0x18   : > { %1073 = shalt.err (!%p1070_p13)
}
  0x19   : > { %s1074_s6 = scalar_lea.vmem %s144_s22, 256  ;;  %p1082_p6 = scmp.lt.s32.totalorder %s144_s22, %s144_s22 }
  0x1a   : > { %p1075_p0 = scmp.ne.s32.totalorder %s144_s22, %s1074_s6  ;;  %p1083_p1 = scmp.lt.s32.totalorder %s1074_s6, %s1074_s6 }
  0x1c   : > { %p1077_p2 = pnand %p1075_p0, %p1063_p9  ;;  %p1084_p4 = por %p1083_p1, %p1082_p6 }
  0x1e   : > { %p1078_p3 = pneg %p1077_p2 }
  0x20   : > { %p1085_p5 = pnand %p1084_p4, %p1078_p3 }
  0x22   : > { %1088 = shalt.err (!%p1085_p5)
}
  0x23   : > { %s1239_s7 = smov 128   ;;  %s1240_s8 = smov 8  }
  0x24   : > { %980 = dma.hbm_to_vmem [thread:$0]  (!%p1316_p7), %s1483_s0, 256, %s144_s22, [#allocation4], %s1239_s7, %s1239_s7, %s1240_s8  }
  0x25   : > { %s1089_s21 = scalar_lea.hbm %s1484_s1, 256 }
  0x26   : > { %p1090_p8 = scmp.ne.s32.totalorder %s1484_s1, %s1089_s21  ;;  %p1096_p5 = scmp.lt.u32.totalorder %s1089_s21, %s1484_s1 }
  0x28   : > { %p1092_p1 = pnand %p1090_p8, %p1063_p9 }
  0x2a   : > { %p1093_p4 = pneg %p1092_p1 }
  0x2c   : > { %p1098_p10 = pnand %p1096_p5, %p1093_p4 }
  0x2e   : > { %1101 = shalt.err (!%p1098_p10)
}
  0x2f   : > { %s1102_s22 = scalar_lea.vmem %s1320_s25, 256  ;;  %p1110_p0 = scmp.lt.s32.totalorder %s1320_s25, %s1320_s25 }
  0x30   : > { %p1103_p11 = scmp.ne.s32.totalorder %s1320_s25, %s1102_s22  ;;  %p1111_p2 = scmp.lt.s32.totalorder %s1102_s22, %s1102_s22 }
  0x32   : > { %p1105_p12 = pnand %p1103_p11, %p1063_p9  ;;  %p1112_p3 = por %p1111_p2, %p1110_p0 }
  0x34   : > { %p1106_p13 = pneg %p1105_p12 }
  0x36   : > { %p1113_p6 = pnand %p1112_p3, %p1106_p13 }
  0x38   : > { %1116 = shalt.err (!%p1113_p6)
}
  0x39   : > { %983 = dma.hbm_to_vmem [thread:$0]  (!%p1316_p7), %s1484_s1, 256, %s1320_s25, [#allocation7], %s1239_s7, %s1239_s7, %s1240_s8  }
  0x3a   : > { %s25_s4 = sadd.s32 1, %s1231_s16  ;;  %s81_s5 = sadd.s32 1, %s1223_s14 }
  0x3b   : > { %p26_p9 = scmp.ge.s32.totalorder %s25_s4, 3  ;;  %p88_p8 = scmp.ne.s32.totalorder %s1223_s14, %s1219_s13 }
  0x3c   : > { %p89_p1 = scmp.eq.s32.totalorder %s1235_s17, 0  ;;  %p990_p4 = scmp.lt.s32.totalorder %s1235_s17, 3 }
  0x3d   : > { %s1507_s4 = smov (%p26_p9, %s25_s4), 0  ;;  %s170_s23 = sand.u32 1, %s1235_s17  }
  0x3e   : > { %p90_p5 = por %p89_p1, %p88_p8  ;;  %s78_s6 = ssub.s32 %s1231_s16, %s1507_s4 }
  0x3f   : > { %p79_p10 = scmp.eq.s32.totalorder %s78_s6, 0  ;;  %s172_s9 = sand.u32 1, %s1223_s14  }
  0x40   : > { %s892_s10 = sshll.u32 %s172_s9, 3  ;;  %s893_s11 = sshll.u32 %s1231_s16, 7 }
  0x41   : > { %s1383_s12 = scalar_select %p79_p10, %s1223_s14, %s81_s5  }
  0x42   : > { %s1388_s8 = scalar_lea.hbm %s1485_s2, %s893_s11  ;;  %s174_s21 = scalar_lea.vmem [#allocation8], %s892_s10 }
  0x43   : > { %s183_s24 = sshll.u32 %s174_s21, 4  ;;  %p1392_p7 = pnand %p990_p4, %p90_p5  ;;  %s1396_s24 = int_to_ptr.vmem [resolvable:$true] %s183_s24 }
  0x44   : > { %s171_s27 = scalar_lea.sflag [#allocation4], %s170_s23  ;;  %s1117_s28 = scalar_lea.hbm %s1388_s8, 128 }
  0x45   : > { %p1118_p11 = scmp.ne.s32.totalorder %s1388_s8, %s1117_s28  ;;  %p1119_p12 = pneg %p1392_p7 }
  0x46   : > { %s1122_s30 = scalar_lea.hbm %s1485_s2, 384  ;;  %p1123_p2 = scmp.lt.u32.totalorder %s1388_s8, %s1485_s2 }
  0x47   : > { %p1120_p13 = pnand %p1119_p12, %p1118_p11  ;;  %p1124_p3 = scmp.lt.u32.totalorder %s1122_s30, %s1117_s28 }
  0x48   : > { %p1126_p9 = scmp.lt.u32.totalorder %s1117_s28, %s1388_s8 }
  0x49   : > { %p1121_p0 = pneg %p1120_p13  ;;  %p1125_p6 = por %p1124_p3, %p1123_p2 }
  0x4b   : > { %p1127_p8 = por %p1126_p9, %p1125_p6 }
  0x4d   : > { %p1128_p1 = pnand %p1127_p8, %p1121_p0 }
  0x4f   : > { %1131 = shalt.err (!%p1128_p1)
}
  0x50   : > { %s1132_s23 = scalar_lea.vmem %s1396_s24, 128  ;;  %s1241_s9 = smov [#allocation8]  }
  0x51   : > { %p1133_p4 = scmp.ne.s32.totalorder %s1396_s24, %s1132_s23  ;;  %s1137_s10 = sshll.u32 %s1241_s9, 4  ;;  %s1138_s10 = int_to_ptr.vmem [resolvable:$false] %s1137_s10 }
  0x52   : > { %s1139_s11 = scalar_lea.vmem %s1138_s10, 256  ;;  %p1140_p11 = scmp.lt.s32.totalorder %s1396_s24, %s1138_s10 }
  0x53   : > { %p1135_p5 = pnand %p1133_p4, %p1119_p12  ;;  %p1141_p13 = scmp.lt.s32.totalorder %s1139_s11, %s1132_s23 }
  0x55   : > { %p1136_p10 = pneg %p1135_p5  ;;  %p1142_p2 = por %p1141_p13, %p1140_p11 }
  0x57   : > { %p1143_p3 = pnand %p1142_p2, %p1136_p10 }
  0x59   : > { %1146 = shalt.err (!%p1143_p3)
}
  0x5a   : > { %987 = dma.hbm_to_vmem [thread:$0]  (!%p1392_p7), %s1388_s8, 128, %s1396_s24, %s171_s27  }
  0x5b   : > { %p1494_p0 = scmp.ne.s32.totalorder %s1491_s20, 0 }
  0x5c   : > { %p1495_p12 = scmp.eq.s32.totalorder (!%p1494_p0), %s1296_s18, 0 }
  0x5d   : > { %192 = sbr.rel (%p1494_p0) target bundleno = 581 (0x245), region = 32 }
  0x64   : > { %1198 = dma.done.wait (%p1495_p12), [#allocation4], 256   ;;  %p1496_p6 = pmov %p1495_p12 }
  0x66   : > { %1200 = vsyncadd (%p1496_p6), [#allocation4], 4294967040  ;;  %p1497_p9 = pmov %p1496_p6 }
  0x67   : > { %p1498_p8 = pmov %p1496_p6 }
  0x68   : > { %1202 = dma.done.wait (%p1497_p9), [#allocation7], 256  }
  0x69   : > { %1204 = vsyncadd (%p1498_p8), [#allocation7], 4294967040  ;;  %s202_s25 = sand.u32 1, %s1296_s18   ;;  %s204_s7 = sand.u32 1, %s1219_s13  }
  0x6a   : > { %s897_s8 = sshll.u32 %s204_s7, 3  ;;  %s203_s20 = scalar_lea.sflag [#allocation4], %s202_s25 }
  0x6b   : > { %s206_s21 = scalar_lea.vmem [#allocation8], %s897_s8  ;;  %p1499_p7 = scmp.ne.s32.totalorder %s1490_s19, 0 }
  0x6d   : > { %1206 = dma.done.wait (%p1499_p7), %s203_s20, 128  }
  0x6e   : > { %1208 = vsyncadd (%p1499_p7), %s203_s20, 4294967168  ;;  %p898_p1 = scmp.ne.s32.totalorder %s1227_s15, 0 }
  0x6f   : > { %vm230_vm0 = vcmask (!%p898_p1), 64512   ;;  %v1242_v0 = vmov (!%p898_p1), 0.0  }
  0x70   : > { %229 = sbr.rel (%p898_p1) target bundleno = 119 (0x77), region = 48  ;;  %231 = vst.msk [vmem:[#allocation2] sm:$0xff] (!%p898_p1), %vm230_vm0, %v1242_v0  ;;  %232 = vst.msk [vmem:[#allocation2 + $0x8] sm:$0xff] (!%p898_p1), %vm230_vm0, %v1242_v0 }
  0x77 PF: > { %v235_v1 = vld [vmem:[%s206_s21] sm:$0xff]  ;;  %vm236_vm1 = vcmask 523264   ;;  %v1243_v7 = vmov 0   ;;  %v735_v8 = vld [vmem:[#allocation6] sm:$0xff]  ;;  %v736_v12 = vld [vmem:[#allocation6 + $0x8] sm:$0xff]  ;;  %v764_v41 = vlaneseq  ;;  %s899_s19 = sshll.u32 %s1227_s15, 3 }
  0x78   : > { %v233_v2 = vld [vmem:[#allocation3] sm:$0xff]  ;;  %v234_v3 = vld [vmem:[#allocation3 + $0x8] sm:$0xff]  ;;  %v244_v4 = vsel %vm236_vm1, %v235_v1, 0  ;;  %1052 = vset.pattern.permute.xlu0 %v1243_v7  ;;  %v766_v47 = vstv %s899_s19  ;;  %v772_v49 = vld [vmem:[#allocation2 + $0x8] sm:$0xff]  ;;  %vm775_vm3 = vcmask 64512   ;;  %p900_p4 = scmp.ne.s32.totalorder %s1227_s15, 2 }
  0x79   : > { %v238_v5 = vsel %vm236_vm1, %v233_v2, 0  ;;  %v241_v6 = vsel %vm236_vm1, %v234_v3, 0  ;;  %v247_v9 = vand.u32 4294901760, %v244_v4  ;;  %739 = vperm.xlu0 %1052, %v735_v8   ;;  %v765_v46 = vand.u32 127, %v764_v41  ;;  %v771_v51 = vld [vmem:[#allocation2] sm:$0xff] }
  0x7a   : > { %v312_v10 = vand.u32 4294901760, %v238_v5  ;;  %v322_v11 = vand.u32 4294901760, %v241_v6  ;;  %vm790_vm4 = vcmask (!%p900_p4), 7168  }
  0x7b   : > { %938 = vmatprep.subr.mxu0 %v247_v9  ;;  %923 = vmatprep.subr.mxu1 %v247_v9  ;;  %v334_v15 = vsub.f32 %v244_v4, %v247_v9  ;;  %v767_v48 = vadd.s32 %v766_v47, %v765_v46 }
  0x7c   : > { %v313_v13 = vsub.f32 %v238_v5, %v312_v10  ;;  %v323_v14 = vsub.f32 %v241_v6, %v322_v11  ;;  %939 = vmatpush3.xpose.msra.mxu0 %v247_v9  ;;  %924 = vmatpush3.xpose.msra.mxu1 %v247_v9 }
  0x7d   : > { %v335_v18 = vand.u32 4294901760, %v334_v15  ;;  %744 = vperm.xlu0 %1052, %v736_v12   ;;  %vm768_vm2 = vcmp.lt.s32.totalorder %v767_v48, 20 }
  0x7e   : > { %v314_v16 = vand.u32 4294901760, %v313_v13  ;;  %v324_v17 = vand.u32 4294901760, %v323_v14 }
  0x7f   : > { %v336_v20 = vsub.f32 %v334_v15, %v335_v18  ;;  %943 = vmatprep.subr.mxu0 %v335_v18 }
  0x80   : > { %940 = vmatprep.mubr.f32.mxu0 %v314_v16  ;;  %v315_v19 = vsub.f32 %v313_v13, %v314_v16  ;;  %v325_v21 = vsub.f32 %v323_v14, %v324_v17 }
  0x81   : > { %941 = vmatmul.mubr.f32.vlgmr.msra.gmra.mrb[0].mxu0 %v324_v17  ;;  %v337_v23 = vand.u32 4294901760, %v336_v20 }
  0x82   : > { %v316_v22 = vand.u32 4294901760, %v315_v19  ;;  %v326_v24 = vand.u32 4294901760, %v325_v21  ;;  %944 = vmatpush3.xpose.msra.mxu0 %v335_v18  ;;  %945 = vmatprep.mubr.f32.mxu0 %v312_v10 }
  0x83   : > { %948 = vmatprep.subr.mxu0 %v247_v9  ;;  %928 = vmatprep.subr.mxu1 %v337_v23 }
  0x84   : > { %925 = vmatprep.mubr.f32.mxu1 %v316_v22 }
  0x85   : > { %926 = vmatmul.mubr.f32.vlgmr.msra.gmra.mrb[0].mxu1 %v326_v24 }
  0x86   : > { %929 = vmatpush3.xpose.msra.mxu1 %v337_v23  ;;  %930 = vmatprep.mubr.f32.mxu1 %v312_v10 }
  0x87   : > { %933 = vmatprep.subr.mxu1 %v334_v15 }
  0x89   : > { %946 = vmatmul.mubr.f32.vlgmr.msra.gmra.mrb[0].mxu0 %v322_v11 }
  0x8a   : > { %949 = vmatpush3.xpose.msra.mxu0 %v247_v9  ;;  %950 = vmatprep.mubr.f32.mxu0 %v312_v10 }
  0x8d   : > { %931 = vmatmul.mubr.f32.vlgmr.msra.gmra.mrb[0].mxu1 %v322_v11 }
  0x8e   : > { %934 = vmatpush3.xpose.msra.mxu1 %v334_v15  ;;  %935 = vmatprep.mubr.f32.mxu1 %v313_v13 }
  0x91   : > { %951 = vmatmul.mubr.f32.vlgmr.msra.gmra.mrb[0].mxu0 %v322_v11 }
  0x95   : > { %936 = vmatmul.mubr.f32.vlgmr.msra.gmra.mrb[0].mxu1 %v323_v14 }
  0xf8   : > { %v740_v25 = vpop.permute.xlu0 %739 }
  0xfc   : > { %v745_v31 = vpop.permute.xlu0 %744 }
 0x164   : > { %v952_v26 = vpop.f32.mrb[0].mxu0 }
 0x165   : > { %v725_v27 = vpop.f32.mrb[1].mxu0 }
 0x168   : > { %v937_v28 = vpop.f32.mrb[0].mxu1 }
 0x169   : > { %v953_v29 = vadd.f32 %v952_v26, %v937_v28  ;;  %v484_v30 = vpop.f32.mrb[1].mxu1 }
 0x16a   : > { %v954_v32 = vadd.f32 %v725_v27, %v484_v30 }
 0x16b   : > { %v748_v33 = vsub.f32 %v953_v29, %v745_v31 }
 0x16c   : > { %v747_v34 = vsub.f32 %v954_v32, %v740_v25 }
 0x16d   : > { %v750_v35 = vmul.f32 -100.0, %v748_v33 }
 0x16e   : > { %v749_v36 = vmul.f32 -100.0, %v747_v34 }
 0x16f   : > { %v752_v37 = vmin.f32 %v750_v35, 50.0 }
 0x170   : > { %v751_v38 = vmin.f32 %v749_v36, 50.0 }
 0x171   : > { %v755_v39 = vmul.f32 1.442695, %v752_v37 }
 0x172   : > { %v753_v40 = vmul.f32 1.442695, %v751_v38 }
 0x173   : > { %1053 = vpow2.f32 %v755_v39 }
 0x174   : > { %1055 = vpow2.f32 %v753_v40 }
 0x17d   : > { %v1054_v42 = vpop.eup %1053 }
 0x17e   : > { %v1056_v43 = vpop.eup %1055  ;;  %v758_v44 = vadd.f32 1.0, %v1054_v42 }
 0x17f   : > { %v757_v45 = vadd.f32 1.0, %v1056_v43 }
 0x180   : > { %1057 = vrcp.f32 %v758_v44 }
 0x181   : > { %1059 = vrcp.f32 %v757_v45 }
 0x189   : > { %781 = sbr.rel (%p900_p4) target bundleno = 555 (0x22b), region = 52 }
 0x18a   : > { %v1058_v50 = vpop.eup %1057 }
 0x18b   : > { %v1060_v52 = vpop.eup %1059  ;;  %v770_v53 = vsel %vm768_vm2, %v1058_v50, 0.0 }
 0x18c   : > { %v774_v54 = vadd.f32 %v772_v49, %v770_v53  ;;  %v769_v55 = vsel %vm768_vm2, %v1060_v52, 0.0 }
 0x18d   : > { %v773_v56 = vadd.f32 %v771_v51, %v769_v55 }
 0x18e   : > { %777 = vst.msk [vmem:[#allocation2 + $0x8] sm:$0xff] %vm775_vm3, %v774_v54 }
 0x18f   : > { %776 = vst.msk [vmem:[#allocation2] sm:$0xff] %vm775_vm3, %v773_v56 }
 0x195   : > { %v783_v58 = vld [vmem:[#allocation2 + $0x8] sm:$0xff] }
 0x196   : > { %v782_v57 = vld [vmem:[#allocation2] sm:$0xff]  ;;  %v787_v60 = vsel %vm775_vm3, %v783_v58, 0.0 }
 0x197   : > { %v784_v59 = vsel %vm775_vm3, %v782_v57, 0.0 }
 0x198   : > { %785 = vadd.xlane.f32.xlu0 %v784_v59 }
 0x19c   : > { %788 = vadd.xlane.f32.xlu0 %v787_v60 }
 0x225   : > { %v786_v61 = vpop.xlane.xlu0 %785 }
 0x226   : > { %791 = vst.msk [vmem:[#allocation9] sm:$0xff] %vm790_vm4, %v786_v61 }
 0x229   : > { %v789_v62 = vpop.xlane.xlu0 %788 }
 0x22a   : > { %792 = vst.msk [vmem:[#allocation9 + $0x8] sm:$0xff] %vm790_vm4, %v789_v62 }
 0x22b PF: > { %p993_p5 = scmp.eq.s32.totalorder %s1296_s18, 2  ;;  %s1244_s24 = smov [#allocation9]  }
 0x22c   : > { %s802_s26 = sshll.u32 %s1244_s24, 4  ;;  %s803_s26 = int_to_ptr.vmem [resolvable:$true] %s802_s26 }
 0x22d   : > { %s1147_s15 = scalar_lea.vmem %s803_s26, 256  ;;  %p1154_p2 = scmp.lt.s32.totalorder %s803_s26, %s803_s26 }
 0x22e   : > { %p1148_p10 = scmp.ne.s32.totalorder %s803_s26, %s1147_s15  ;;  %p1155_p3 = scmp.lt.s32.totalorder %s1147_s15, %s1147_s15 }
 0x230   : > { %p1149_p11 = pnand %p1148_p10, %p993_p5  ;;  %p1156_p0 = por %p1155_p3, %p1154_p2 }
 0x232   : > { %p1150_p13 = pneg %p1149_p11 }
 0x234   : > { %p1157_p12 = pnand %p1156_p0, %p1150_p13 }
 0x236   : > { %1160 = shalt.err (!%p1157_p12)
}
 0x237   : > { %s1161_s22 = scalar_lea.hbm %s1486_s3, 256 }
 0x238   : > { %p1162_p6 = scmp.ne.s32.totalorder %s1486_s3, %s1161_s22  ;;  %p1167_p7 = scmp.lt.u32.totalorder %s1161_s22, %s1486_s3 }
 0x23a   : > { %p1163_p9 = pnand %p1162_p6, %p993_p5 }
 0x23c   : > { %p1164_p8 = pneg %p1163_p9 }
 0x23e   : > { %p1169_p1 = pnand %p1167_p7, %p1164_p8 }
 0x240   : > { %1172 = shalt.err (!%p1169_p1)
}
 0x241   : > { %s1245_s23 = smov 128   ;;  %s1246_s9 = smov 8  }
 0x242   : > { %974 = dma.vmem_to_hbm [thread:$0]  (%p993_p5), %s803_s26, 256, %s1486_s3, [#allocation5], %s1245_s23, %s1245_s23, %s1246_s9  }
 0x243   : > { %1210 = dma.done.wait (%p993_p5), [#allocation5], 256  }
 0x244   : > { %1212 = vsyncadd (%p993_p5), [#allocation5], 4294967040 }
 0x245 PF: > { %s16_s17 = sadd.s32 1, %s1235_s17   ;;  %s1500_s25 = smov %s1383_s12 }
 0x246   : > { %p13_p4 = scmp.ge.s32.totalorder %s16_s17, 5   ;;  %s1501_s12 = smov %s1219_s13 }
 0x247   : > { %s1502_s13 = smov %s1223_s14  ;;  %s1503_s14 = smov %s1500_s25 }
 0x248   : > { %s1504_s15 = smov %s1231_s16  ;;  %s1505_s16 = smov %s1507_s4 }
 0x249   :  { %15 = sbr.rel (!%p13_p4) target bundleno = 5 (0x5), region = 85 }
 0x250   :  { %818 = vsyncpa [#allocation4], 1 }
 0x251   :  { %820 = vsyncpa [#allocation4 + $0x1], 1 }
 0x252   :  { %821 = vsyncpa [#allocation7], 1 }
 0x253   :  { %822 = vsyncpa [#allocation5], 1 }
 0x254   :  { %824 = vsyncpa [#allocation5 + $0x1], 1 }

</bundles_post_ra>
